<compile_context>
chip_gen: v7x
topology: tpu7x:2x2x1
jax: 0.10.0
libtpu: 0.0.40
codegen_flags: <defaults>
</compile_context>

<pallas_src>
import jax
import jax.numpy as jnp
from jax.experimental import pallas as pl
from jax.experimental.pallas import tpu as pltpu

LANE_CHOICES = (1024, 512, 256, 128)      # lane-dense widths (multiples of 128)
TARGET_TILE_BYTES = 4 * 1024 * 1024       # ~4 MiB per tile
MIN_BLOCKS = 4                            # aim for >= 4 grid steps (v7x 2-TC split)
VMEM_LIMIT_BYTES = 32 * 1024 * 1024       # safe on v5e / v6e / v7x


def _gaussian_kernel(scale_ref, x_ref, o_ref):
    # scale_ref: (1,) f32 scalar in SMEM holding -0.5 / a^2
    # x_ref/o_ref: (tile_r, W) VMEM tiles in the native dtype
    s = scale_ref[0]
    xf = x_ref[...].astype(jnp.float32)
    o_ref[...] = jnp.exp(xf * xf * s).astype(o_ref.dtype)


def _choose_tile_rows(rows, W, itemsize):
    """Row-tile: multiple of the sublane packing, ~TARGET_TILE_BYTES of data,
    and small enough to give >= MIN_BLOCKS grid steps when possible."""
    sub = 8 * max(1, 4 // itemsize)       # 8 (f32), 16 (bf16), 32 (int8/fp8)
    if rows <= sub:
        return rows                       # single full-extent block (tiny input)
    target = max(sub, (TARGET_TILE_BYTES // (W * itemsize)) // sub * sub)
    split = pl.cdiv(rows, MIN_BLOCKS)
    split = max(sub, ((split + sub - 1) // sub) * sub)
    return min(target, split)


def gaussian_activation(x, a, donate_input=False):
    """x: any-shaped float array (e.g. NCHW). a: scalar parameter, shape (1,)."""
    orig_shape = x.shape
    dtype = x.dtype
    n = int(x.size)
    itemsize = jnp.dtype(dtype).itemsize

    # Precompute the scalar scale once (f32), outside the kernel.
    scale = (-0.5 / (a.astype(jnp.float32) ** 2)).reshape((1,))

    flat = x.reshape(-1)
    n_main = (n // 128) * 128             # 128-aligned prefix handled by the kernel

    if n_main == 0:
        # Fewer than 128 elements: not worth a pallas_call.
        out = jnp.exp(flat.astype(jnp.float32) ** 2 * scale[0]).astype(dtype)
        return out.reshape(orig_shape)

    # Choose the widest lane count that divides the aligned prefix (zero-copy reshape).
    W = 128
    for w in LANE_CHOICES:
        if n_main % w == 0:
            W = w
            break
    rows = n_main // W
    tile_r = _choose_tile_rows(rows, W, itemsize)
    grid = (pl.cdiv(rows, tile_r),)       # partial last row-block handled by Pallas

    main2d = (flat if n_main == n else flat[:n_main]).reshape(rows, W)

    io_aliases = {1: 0} if donate_input else {}

    out2d = pl.pallas_call(
        _gaussian_kernel,
        out_shape=jax.ShapeDtypeStruct((rows, W), dtype),
        grid=grid,
        in_specs=[
            pl.BlockSpec(memory_space=pltpu.SMEM),           # scale scalar
            pl.BlockSpec((tile_r, W), lambda i: (i, 0)),     # x tile
        ],
        out_specs=pl.BlockSpec((tile_r, W), lambda i: (i, 0)),
        input_output_aliases=io_aliases,
        compiler_params=pltpu.CompilerParams(
            dimension_semantics=("parallel",),               # 2-TC split on v7x
            vmem_limit_bytes=VMEM_LIMIT_BYTES,
        ),
    )(scale, main2d)

    out_main = out2d.reshape(-1)

    if n_main != n:
        # <128-element tail: plain jnp.exp (negligible traffic, no pad/slice passes).
        tail = flat[n_main:].astype(jnp.float32)
        tail_out = jnp.exp(tail * tail * scale[0]).astype(dtype)
        out = jnp.concatenate([out_main, tail_out])
    else:
        out = out_main
    return out.reshape(orig_shape)


if __name__ == "__main__":
    key = jax.random.PRNGKey(0)

    # Primary test: NCHW f32, fully aligned zero-copy path.
    x = jax.random.normal(key, (2, 4, 16, 16), dtype=jnp.float32)
    a = jnp.ones((1,), dtype=jnp.float32)  # module default: a = 1.0 (ones(1))

    out = jax.block_until_ready(gaussian_activation(x, a))
    ref = jnp.exp(-(x ** 2) / (2.0 * a[0] ** 2))
    assert out.shape == x.shape and out.dtype == x.dtype
    assert jnp.allclose(out, ref, atol=1e-6, rtol=1e-6)

    # Secondary test: ragged shape + bf16 I/O (exercises prefix + tail path).
    key2 = jax.random.PRNGKey(1)
    xb = jax.random.normal(key2, (3, 5, 7, 11), dtype=jnp.float32).astype(jnp.bfloat16)
    a2 = 1.5 * jnp.ones((1,), dtype=jnp.float32)

    out_b = jax.block_until_ready(gaussian_activation(xb, a2))
    ref_b = jnp.exp(-(xb.astype(jnp.float32) ** 2) / (2.0 * a2[0] ** 2)).astype(jnp.bfloat16)
    assert out_b.shape == xb.shape and out_b.dtype == xb.dtype
    assert jnp.allclose(out_b.astype(jnp.float32), ref_b.astype(jnp.float32),
                        atol=2e-2, rtol=2e-2)

    # Third test: f32 shape whose row count is not a multiple of the tile
    # (exercises the partial-last-block path with W=128, multi-step grid).
    key3 = jax.random.PRNGKey(2)
    xc = jax.random.normal(key3, (2, 3, 50, 50), dtype=jnp.float32)
    a3 = 0.7 * jnp.ones((1,), dtype=jnp.float32)

    out_c = jax.block_until_ready(gaussian_activation(xc, a3))
    ref_c = jnp.exp(-(xc ** 2) / (2.0 * a3[0] ** 2))
    assert out_c.shape == xc.shape and out_c.dtype == xc.dtype
    assert jnp.allclose(out_c, ref_c, atol=1e-6, rtol=1e-6)

    print("KERNEL_OK")
</pallas_src>

<mosaic_0001>
module attributes {stable_mosaic.version = 11 : i64} {
  func.func @_gaussian_kernel(%arg0: i32, %arg1: memref<1xf32, #tpu.memory_space<smem>>, %arg2: memref<2x1024xf32, #tpu.memory_space<vmem>>, %arg3: memref<2x1024xf32, #tpu.memory_space<vmem>>) attributes {dimension_semantics = [#tpu.dimension_semantics<parallel>], iteration_bounds = array<i64: 1>, scalar_prefetch = 0 : i64, scratch_operands = 0 : i64, tpu.core_type = #tpu.core_type<tc>, window_params = [{transform_indices = @transform_0, window_bounds = array<i64: 1>}, {transform_indices = @transform_1, window_bounds = array<i64: 2, 1024>}, {transform_indices = @transform_2, window_bounds = array<i64: 2, 1024>}]} {
    %c0 = arith.constant 0 : index
    %0 = memref.load %arg1[%c0] : memref<1xf32, #tpu.memory_space<smem>>
    %c0_0 = arith.constant 0 : index
    %c0_1 = arith.constant 0 : index
    %1 = vector.load %arg2[%c0_0, %c0_1] : memref<2x1024xf32, #tpu.memory_space<vmem>>, vector<2x1024xf32>
    %2 = arith.mulf %1, %1 : vector<2x1024xf32>
    %3 = vector.broadcast %0 : f32 to vector<2x1024xf32>
    %4 = arith.mulf %2, %3 : vector<2x1024xf32>
    %5 = math.exp %4 : vector<2x1024xf32>
    %c0_2 = arith.constant 0 : index
    %c0_3 = arith.constant 0 : index
    %6 = vector.load %arg3[%c0_2, %c0_3] : memref<2x1024xf32, #tpu.memory_space<vmem>>, vector<2x1024xf32>
    tpu.vector_store %arg3[%c0_2, %c0_3], %5 {strides = array<i32>} : memref<2x1024xf32, #tpu.memory_space<vmem>>, vector<2x1024xf32>,
    return
  }
  func.func @transform_0(%arg0: i32) -> i32 {
    %c0_i32 = arith.constant 0 : i32
    %c0_i32_0 = arith.constant 0 : i32
    return %c0_i32 : i32
  }
  func.func @transform_1(%arg0: i32) -> (i32, i32) {
    %c0_i32 = arith.constant 0 : i32
    %c0_i32_0 = arith.constant 0 : i32
    return %arg0, %c0_i32 : i32, i32
  }
  func.func @transform_2(%arg0: i32) -> (i32, i32) {
    %c0_i32 = arith.constant 0 : i32
    %c0_i32_0 = arith.constant 0 : i32
    return %arg0, %c0_i32 : i32, i32
  }
}

</mosaic_0001>

<bundles_post_ra>
// kernel: tpu_custom_call.1
= control target key start
LH: loop header
LB: loop body
LE: loop exit
PB: predicated region body
PF: predicated region fallthrough
CT: control target
= control target key end

     0   :  { %8 = vsyncpa [#allocation4], 0  ;;  %s152_s0 = inlined_call_operand.<no memory space> [shape: f32[1], index: 0, kind: input, shape index: {}]   ;;  %s153_s1 = inlined_call_operand.hbm [shape: f32[2,1024], index: 1, kind: input, shape index: {}]   ;;  %s154_s2 = inlined_call_operand.hbm [shape: f32[2,1024], index: 2, kind: output, shape index: {}]  }
   0x1   :  { %9 = vsyncpa [#allocation5], 0  ;;  %s108_s9 = smov [#allocation3]   ;;  %s60_s13 = scalar_lea.hbm %s153_s1, 256 }
   0x2   :  { %s18_s10 = sshll.u32 %s108_s9, 4  ;;  %p61_p0 = scmp.ne.s32.totalorder %s153_s1, %s60_s13  ;;  %s19_s10 = int_to_ptr.vmem [resolvable:$true] %s18_s10 }
   0x3   :  { %p64_p1 = scmp.lt.u32.totalorder %s60_s13, %s153_s1 }
   0x5   :  { %p66_p2 = pnand %p64_p1, %p61_p0 }
   0x7   :  { %69 = shalt.err (!%p66_p2)
}
   0x8   :  { %s70_s18 = scalar_lea.vmem %s19_s10, 256  ;;  %p75_p4 = scmp.lt.s32.totalorder %s19_s10, %s19_s10 }
   0x9   :  { %p71_p3 = scmp.ne.s32.totalorder %s19_s10, %s70_s18  ;;  %p76_p5 = scmp.lt.s32.totalorder %s70_s18, %s70_s18 }
   0xb   :  { %p77_p6 = por %p76_p5, %p75_p4 }
   0xd   :  { %p78_p7 = pnand %p77_p6, %p71_p3 }
   0xf   :  { %81 = shalt.err (!%p78_p7)
}
  0x10   :  { %21 = dma.hbm_to_vmem [thread:$0]  %s153_s1, 256, %s19_s10, [#allocation4]  }
  0x11   :  { %104 = dma.done.wait [#allocation4], 256  }
  0x12   :  { %105 = vsyncadd [#allocation4], 4294967040  ;;  %v26_v0 = vld [vmem:[#allocation3] sm:$0xff]  ;;  %v30_v1 = vstv %s152_s0  ;;  %v27_v2 = vld [vmem:[#allocation3 + $0x8] sm:$0xff]  ;;  %s109_s23 = smov [#allocation6]  }
  0x13   :  { %v28_v3 = vmul.f32 %v26_v0, %v26_v0  ;;  %v29_v4 = vmul.f32 %v27_v2, %v27_v2  ;;  %s45_s24 = sshll.u32 %s109_s23, 4  ;;  %s46_s24 = int_to_ptr.vmem [resolvable:$true] %s45_s24 }
  0x14   :  { %s82_s1 = scalar_lea.vmem %s46_s24, 256  ;;  %p87_p9 = scmp.lt.s32.totalorder %s46_s24, %s46_s24 }
  0x15   :  { %v31_v5 = vmul.f32 %v30_v1, %v28_v3  ;;  %v32_v6 = vmul.f32 %v30_v1, %v29_v4  ;;  %p83_p8 = scmp.ne.s32.totalorder %s46_s24, %s82_s1  ;;  %p88_p10 = scmp.lt.s32.totalorder %s82_s1, %s82_s1 }
  0x17   :  { %v33_v7 = vmul.f32 1.442695, %v31_v5  ;;  %v35_v8 = vmul.f32 1.442695, %v32_v6  ;;  %p89_p11 = por %p88_p10, %p87_p9 }
  0x19   :  { %56 = vpow2.f32 %v33_v7  ;;  %p90_p12 = pnand %p89_p11, %p83_p8 }
  0x1a   :  { %58 = vpow2.f32 %v35_v8 }
  0x23   :  { %v57_v9 = vpop.eup %56 }
  0x24   :  { %v59_v10 = vpop.eup %58  ;;  %37 = vst [vmem:[#allocation6] sm:$0xff] %v57_v9 }
  0x25   :  { %38 = vst [vmem:[#allocation6 + $0x8] sm:$0xff] %v59_v10 }
  0x26   :  { %93 = shalt.err (!%p90_p12)
}
  0x27   :  { %s94_s26 = scalar_lea.hbm %s154_s2, 256 }
  0x28   :  { %p95_p13 = scmp.ne.s32.totalorder %s154_s2, %s94_s26  ;;  %p98_p0 = scmp.lt.u32.totalorder %s94_s26, %s154_s2 }
  0x2a   :  { %p100_p1 = pnand %p98_p0, %p95_p13 }
  0x2c   :  { %103 = shalt.err (!%p100_p1)
}
  0x2d   :  { %48 = dma.vmem_to_hbm [thread:$0]  %s46_s24, 256, %s154_s2, [#allocation5]  }
  0x2e   :  { %106 = dma.done.wait [#allocation5], 256  }
  0x2f   :  { %107 = vsyncadd [#allocation5], 4294967040 }
  0x30   :  { %52 = vsyncpa [#allocation4], 1 }
  0x31   :  { %53 = vsyncpa [#allocation5], 1 }

</bundles_post_ra>
